<compile_context>
chip_gen: v7x
topology: tpu7x:2x2x1
jax: 0.10.0
libtpu: 0.0.40
codegen_flags: <defaults>
</compile_context>

<pallas_src>
import functools

import jax
import jax.numpy as jnp
from jax.experimental import pallas as pl
from jax.experimental.pallas import tpu as pltpu

_SQRT_2PI = (2.0 * 3.14159) ** 0.5   # matches the torch source's pi literal
_MASK_DIST = 1e6                      # sentinel distance -> exp underflows to exactly 0


def gaussian_layer_kernel(xi_ref, xjt_ref, mi_ref, mjt_ref,
                          mean_ref, coef_ref, nhiv_ref, out_ref,
                          *, binary_mask, gaussian_dtype):
    # xi_ref:   (TB, TI, D)   row-block coords
    # xjt_ref:  (TB, D, TJ)   column-block coords (pre-transposed in wrapper)
    # mi_ref:   (TB, TI, 1)   row-block mask
    # mjt_ref:  (TB, 1, TJ)   column-block mask (pre-transposed)
    # mean_ref: (1, K)  coef_ref: (1, K)  nhiv_ref: (1, K)   (precomputed)
    # out_ref:  (TB, TI, TJ, K)
    xi = xi_ref[...].astype(jnp.float32)
    xjt = xjt_ref[...].astype(jnp.float32)

    tb, ti, d_dim = xi.shape
    tj = xjt.shape[-1]

    # Lane-dense pairwise squared distances via a static D(=3) loop: the big
    # intermediate is (TB,TI,TJ) with TJ in lanes — no (N,N,D) 3-wide-lane
    # tensor and no XLU reduction over a tiny last axis.
    d2 = jnp.zeros((tb, ti, tj), jnp.float32)
    for d in range(d_dim):
        diff = xi[:, :, d:d + 1] - xjt[:, d:d + 1, :]      # (TB,TI,1)-(TB,1,TJ)
        d2 = d2 + diff * diff
    dist = jnp.sqrt(d2)                                    # (TB, TI, TJ)

    mm = mi_ref[...].astype(jnp.float32) * mjt_ref[...].astype(jnp.float32)

    if binary_mask:
        # Fold the {0,1} mask into the (TB,TI,TJ) plane: masked pairs get a huge
        # distance so the Gaussian underflows to exactly 0.  This removes the
        # per-(i,j,k) multiply in the K-wide chain (mask cost: B*N^2, not B*N^2*K).
        dist = jnp.where(mm > 0.0, dist, _MASK_DIST)

    cdt = gaussian_dtype
    mean = mean_ref[...].astype(cdt).reshape(1, 1, 1, -1)
    coef = coef_ref[...].astype(cdt).reshape(1, 1, 1, -1)
    nhiv = nhiv_ref[...].astype(cdt).reshape(1, 1, 1, -1)  # -0.5 / std^2
    dist_c = dist.astype(cdt)

    u = dist_c[..., None] - mean                           # (TB, TI, TJ, K)
    emb = jnp.exp((u * u) * nhiv) * coef

    if not binary_mask:
        emb = emb * mm.astype(cdt)[..., None]

    out_ref[...] = emb.astype(out_ref.dtype)


def _pick_row_tile(n):
    # Row tile: multiple of 8 (sublane) or the full extent.
    for t in (128, 64, 32, 16, 8):
        if n % t == 0:
            return t
    return n


def _pick_col_tile(n):
    # Column tile lives in the lane dim of the transposed inputs:
    # multiple of 128 or the full extent.
    if n % 128 == 0:
        return min(n, 128)
    return n


def _pick_batch_fold(b, steps_ij, bytes_per_batch_block, out_cap_bytes,
                     min_grid_steps=8):
    """Largest divisor tb of b s.t. the output block fits the VMEM cap AND the
    total grid keeps >= min_grid_steps steps (so v7x's 2 TCs both get work)."""
    target = min(min_grid_steps, b * steps_ij)
    best = 1
    for tb in range(1, b + 1):
        if b % tb:
            continue
        if tb * bytes_per_batch_block > out_cap_bytes:
            break
        if (b // tb) * steps_ij >= target:
            best = tb
    return best


def gaussian_layer(x, node_mask, means_w, stds_w, *,
                   out_dtype=jnp.float32,
                   gaussian_dtype=jnp.float32,
                   binary_mask=True):
    """GaussianLayer forward.

    x: (B, N, D) f32, node_mask: (B, N, 1) f32, means_w/stds_w: (1, K) f32.

    out_dtype=jnp.bfloat16 halves HBM writeback (the v5e/v6e bottleneck);
    gaussian_dtype=jnp.bfloat16 additionally runs the K-wide Gaussian chain in
    bf16 (v6e/v7x; ~1e-2 accuracy).  Defaults are exact f32 like the torch code.
    binary_mask=True folds the mask into the distance plane (exp-underflow);
    set False if node_mask can be fractional.
    """
    B, N, D = x.shape
    K = means_w.shape[-1]

    ti = _pick_row_tile(N)
    tj = _pick_col_tile(N)
    out_itemsize = jnp.dtype(out_dtype).itemsize
    per_batch_blk = ti * tj * K * out_itemsize
    steps_ij = (N // ti) * (N // tj)
    # 8 MiB output blocks double-buffer comfortably on v5e/v6e/v7x.
    tb = _pick_batch_fold(B, steps_ij, per_batch_blk, 8 * 1024 * 1024)
    blk_bytes = tb * per_batch_blk

    # VMEM budget = double-buffered output block + inputs + headroom; never the
    # full 64 MiB a v7x TensorCore physically has.
    vmem_limit = int(min(max(2 * blk_bytes + 4 * 1024 * 1024, 16 * 1024 * 1024),
                         48 * 1024 * 1024))

    # Precompute the (1,K) Gaussian parameters once (no per-grid-step divide).
    mean = means_w.astype(jnp.float32)
    std = jnp.abs(stds_w.astype(jnp.float32)) + 0.01
    inv_std = 1.0 / std
    coef = inv_std / _SQRT_2PI                 # 1 / (sqrt(2*pi)*std)
    nhiv = -0.5 * inv_std * inv_std            # -0.5 / std^2

    # Layout plumbing only: column-side views with N in the lane dim so the
    # kernel needs no in-kernel transposes.
    x_t = jnp.swapaxes(x, 1, 2)                # (B, D, N)
    mask_t = jnp.swapaxes(node_mask, 1, 2)     # (B, 1, N)

    n_out = B * N * N * K
    cost = pl.CostEstimate(
        flops=6 * n_out,
        transcendentals=n_out,
        bytes_accessed=n_out * out_itemsize + 2 * x.size * 4 + 2 * node_mask.size * 4,
    )

    kernel = functools.partial(gaussian_layer_kernel,
                               binary_mask=binary_mask,
                               gaussian_dtype=gaussian_dtype)

    grid = (B // tb, N // ti, N // tj)
    return pl.pallas_call(
        kernel,
        out_shape=jax.ShapeDtypeStruct((B, N, N, K), out_dtype),
        grid=grid,
        in_specs=[
            pl.BlockSpec((tb, ti, D), lambda b, i, j: (b, i, 0)),
            pl.BlockSpec((tb, D, tj), lambda b, i, j: (b, 0, j)),
            pl.BlockSpec((tb, ti, 1), lambda b, i, j: (b, i, 0)),
            pl.BlockSpec((tb, 1, tj), lambda b, i, j: (b, 0, j)),
            pl.BlockSpec((1, K), lambda b, i, j: (0, 0)),
            pl.BlockSpec((1, K), lambda b, i, j: (0, 0)),
            pl.BlockSpec((1, K), lambda b, i, j: (0, 0)),
        ],
        out_specs=pl.BlockSpec((tb, ti, tj, K), lambda b, i, j: (b, i, j, 0)),
        compiler_params=pltpu.CompilerParams(
            dimension_semantics=("parallel", "parallel", "parallel"),
            vmem_limit_bytes=vmem_limit,
        ),
        cost_estimate=cost,
    )(x, x_t, node_mask, mask_t, mean, coef, nhiv)


def gaussian_layer_ref(x, node_mask, means_w, stds_w):
    """Pure-JAX reference (direct cdist formulation, torch-faithful)."""
    diff = x[:, :, None, :] - x[:, None, :, :]
    dist = jnp.sqrt(jnp.sum(diff * diff, axis=-1))[..., None]     # (B,N,N,1)
    mean = means_w.reshape(-1)
    std = jnp.abs(stds_w.reshape(-1)) + 0.01
    a = (2.0 * 3.14159) ** 0.5
    emb = jnp.exp(-0.5 * ((dist - mean) / std) ** 2) / (a * std)  # (B,N,N,K)
    emb = emb * node_mask[:, :, :, None] * node_mask[:, None, :, :]
    return emb


if __name__ == "__main__":
    key = jax.random.PRNGKey(0)
    k_x, k_mean, k_std = jax.random.split(key, 3)

    B, N, D, K = 2, 8, 3, 128

    x = jax.random.normal(k_x, (B, N, D), dtype=jnp.float32)
    # deterministic binary mask with some padded (zeroed) nodes
    lengths = jnp.array([6, 8], dtype=jnp.int32)
    node_mask = (jnp.arange(N)[None, :] < lengths[:, None]).astype(
        jnp.float32)[..., None]                                   # (B, N, 1)

    # nn.Embedding(1, K) weights init'd with uniform(0, 3), as in __init__
    means_w = jax.random.uniform(k_mean, (1, K), jnp.float32, 0.0, 3.0)
    stds_w = jax.random.uniform(k_std, (1, K), jnp.float32, 0.0, 3.0)

    ref = gaussian_layer_ref(x, node_mask, means_w, stds_w)

    # Exact (f32) path — matches the torch module.
    out = gaussian_layer(x, node_mask, means_w, stds_w)
    out = jax.block_until_ready(out)
    assert out.shape == (B, N, N, K)
    assert out.dtype == jnp.float32
    err = float(jnp.max(jnp.abs(out - ref)))
    assert jnp.allclose(out, ref, rtol=2e-5, atol=1e-5), err

    # bf16-output path (halves HBM writeback; recommended on v5e/v6e when the
    # consumer tolerates it). Compute stays f32; only the final store is cast.
    out_bf = gaussian_layer(x, node_mask, means_w, stds_w,
                            out_dtype=jnp.bfloat16)
    out_bf = jax.block_until_ready(out_bf)
    assert out_bf.dtype == jnp.bfloat16
    err_bf = float(jnp.max(jnp.abs(out_bf.astype(jnp.float32) - ref)))
    assert err_bf < 0.5, err_bf

    print("KERNEL_OK")
</pallas_src>

<mosaic_0001>
module attributes {stable_mosaic.version = 11 : i64} {
  func.func @gaussian_layer_kernel(%arg0: i32, %arg1: i32, %arg2: i32, %arg3: memref<1x8x3xf32, #tpu.memory_space<vmem>>, %arg4: memref<1x3x8xf32, #tpu.memory_space<vmem>>, %arg5: memref<1x8x1xf32, #tpu.memory_space<vmem>>, %arg6: memref<1x1x8xf32, #tpu.memory_space<vmem>>, %arg7: memref<1x128xf32, #tpu.memory_space<vmem>>, %arg8: memref<1x128xf32, #tpu.memory_space<vmem>>, %arg9: memref<1x128xf32, #tpu.memory_space<vmem>>, %arg10: memref<1x8x8x128xf32, #tpu.memory_space<vmem>>) attributes {dimension_semantics = [#tpu.dimension_semantics<parallel>, #tpu.dimension_semantics<parallel>, #tpu.dimension_semantics<parallel>], iteration_bounds = array<i64: 2, 1, 1>, scalar_prefetch = 0 : i64, scratch_operands = 0 : i64, tpu.core_type = #tpu.core_type<tc>, window_params = [{transform_indices = @transform_0, window_bounds = array<i64: 1, 8, 3>}, {transform_indices = @transform_1, window_bounds = array<i64: 1, 3, 8>}, {transform_indices = @transform_2, window_bounds = array<i64: 1, 8, 1>}, {transform_indices = @transform_3, window_bounds = array<i64: 1, 1, 8>}, {pipeline_mode = #tpu.pipeline_mode<synchronous>, transform_indices = @transform_4, window_bounds = array<i64: 1, 128>}, {pipeline_mode = #tpu.pipeline_mode<synchronous>, transform_indices = @transform_5, window_bounds = array<i64: 1, 128>}, {pipeline_mode = #tpu.pipeline_mode<synchronous>, transform_indices = @transform_6, window_bounds = array<i64: 1, 128>}, {transform_indices = @transform_7, window_bounds = array<i64: 1, 8, 8, 128>}]} {
    %c0 = arith.constant 0 : index
    %c0_0 = arith.constant 0 : index
    %c0_1 = arith.constant 0 : index
    %0 = vector.load %arg3[%c0, %c0_0, %c0_1] : memref<1x8x3xf32, #tpu.memory_space<vmem>>, vector<1x8x3xf32>
    %c0_2 = arith.constant 0 : index
    %c0_3 = arith.constant 0 : index
    %c0_4 = arith.constant 0 : index
    %1 = vector.load %arg4[%c0_2, %c0_3, %c0_4] : memref<1x3x8xf32, #tpu.memory_space<vmem>>, vector<1x3x8xf32>
    %cst = arith.constant 0.000000e+00 : f32
    %2 = vector.broadcast %cst : f32 to vector<1x8x8xf32>
    %3 = vector.extract_strided_slice %0 {offsets = [0, 0, 0], sizes = [1, 8, 1], strides = [1, 1, 1]} : vector<1x8x3xf32> to vector<1x8x1xf32>
    %4 = vector.extract_strided_slice %1 {offsets = [0, 0, 0], sizes = [1, 1, 8], strides = [1, 1, 1]} : vector<1x3x8xf32> to vector<1x1x8xf32>
    %5 = vector.broadcast %3 : vector<1x8x1xf32> to vector<1x8x8xf32>
    %6 = vector.broadcast %4 : vector<1x1x8xf32> to vector<1x8x8xf32>
    %7 = arith.subf %5, %6 : vector<1x8x8xf32>
    %8 = arith.mulf %7, %7 : vector<1x8x8xf32>
    %9 = arith.addf %2, %8 : vector<1x8x8xf32>
    %10 = vector.extract_strided_slice %0 {offsets = [0, 0, 1], sizes = [1, 8, 1], strides = [1, 1, 1]} : vector<1x8x3xf32> to vector<1x8x1xf32>
    %11 = vector.extract_strided_slice %1 {offsets = [0, 1, 0], sizes = [1, 1, 8], strides = [1, 1, 1]} : vector<1x3x8xf32> to vector<1x1x8xf32>
    %12 = vector.broadcast %10 : vector<1x8x1xf32> to vector<1x8x8xf32>
    %13 = vector.broadcast %11 : vector<1x1x8xf32> to vector<1x8x8xf32>
    %14 = arith.subf %12, %13 : vector<1x8x8xf32>
    %15 = arith.mulf %14, %14 : vector<1x8x8xf32>
    %16 = arith.addf %9, %15 : vector<1x8x8xf32>
    %17 = vector.extract_strided_slice %0 {offsets = [0, 0, 2], sizes = [1, 8, 1], strides = [1, 1, 1]} : vector<1x8x3xf32> to vector<1x8x1xf32>
    %18 = vector.extract_strided_slice %1 {offsets = [0, 2, 0], sizes = [1, 1, 8], strides = [1, 1, 1]} : vector<1x3x8xf32> to vector<1x1x8xf32>
    %19 = vector.broadcast %17 : vector<1x8x1xf32> to vector<1x8x8xf32>
    %20 = vector.broadcast %18 : vector<1x1x8xf32> to vector<1x8x8xf32>
    %21 = arith.subf %19, %20 : vector<1x8x8xf32>
    %22 = arith.mulf %21, %21 : vector<1x8x8xf32>
    %23 = arith.addf %16, %22 : vector<1x8x8xf32>
    %24 = math.sqrt %23 : vector<1x8x8xf32>
    %c0_5 = arith.constant 0 : index
    %c0_6 = arith.constant 0 : index
    %c0_7 = arith.constant 0 : index
    %25 = vector.load %arg5[%c0_5, %c0_6, %c0_7] : memref<1x8x1xf32, #tpu.memory_space<vmem>>, vector<1x8x1xf32>
    %c0_8 = arith.constant 0 : index
    %c0_9 = arith.constant 0 : index
    %c0_10 = arith.constant 0 : index
    %26 = vector.load %arg6[%c0_8, %c0_9, %c0_10] : memref<1x1x8xf32, #tpu.memory_space<vmem>>, vector<1x1x8xf32>
    %27 = vector.broadcast %25 : vector<1x8x1xf32> to vector<1x8x8xf32>
    %28 = vector.broadcast %26 : vector<1x1x8xf32> to vector<1x8x8xf32>
    %29 = arith.mulf %27, %28 : vector<1x8x8xf32>
    %cst_11 = arith.constant 0.000000e+00 : f32
    %30 = vector.broadcast %cst_11 : f32 to vector<1x8x8xf32>
    %31 = arith.cmpf ogt, %29, %30 : vector<1x8x8xf32>
    %cst_12 = arith.constant 1.000000e+06 : f32
    %32 = vector.broadcast %cst_12 : f32 to vector<1x8x8xf32>
    %33 = arith.select %31, %24, %32 : vector<1x8x8xi1>, vector<1x8x8xf32>
    %c0_13 = arith.constant 0 : index
    %c0_14 = arith.constant 0 : index
    %34 = vector.load %arg7[%c0_13, %c0_14] : memref<1x128xf32, #tpu.memory_space<vmem>>, vector<1x128xf32>
    %35 = vector.shape_cast %34 : vector<1x128xf32> to vector<1x1x1x128xf32>
    %c0_15 = arith.constant 0 : index
    %c0_16 = arith.constant 0 : index
    %36 = vector.load %arg8[%c0_15, %c0_16] : memref<1x128xf32, #tpu.memory_space<vmem>>, vector<1x128xf32>
    %37 = vector.shape_cast %36 : vector<1x128xf32> to vector<1x1x1x128xf32>
    %c0_17 = arith.constant 0 : index
    %c0_18 = arith.constant 0 : index
    %38 = vector.load %arg9[%c0_17, %c0_18] : memref<1x128xf32, #tpu.memory_space<vmem>>, vector<1x128xf32>
    %39 = vector.shape_cast %38 : vector<1x128xf32> to vector<1x1x1x128xf32>
    %40 = vector.shape_cast %33 : vector<1x8x8xf32> to vector<1x8x8x1xf32>
    %41 = vector.broadcast %40 : vector<1x8x8x1xf32> to vector<1x8x8x128xf32>
    %42 = vector.broadcast %35 : vector<1x1x1x128xf32> to vector<1x8x8x128xf32>
    %43 = arith.subf %41, %42 : vector<1x8x8x128xf32>
    %44 = arith.mulf %43, %43 : vector<1x8x8x128xf32>
    %45 = vector.broadcast %39 : vector<1x1x1x128xf32> to vector<1x8x8x128xf32>
    %46 = arith.mulf %44, %45 : vector<1x8x8x128xf32>
    %47 = math.exp %46 : vector<1x8x8x128xf32>
    %48 = vector.broadcast %37 : vector<1x1x1x128xf32> to vector<1x8x8x128xf32>
    %49 = arith.mulf %47, %48 : vector<1x8x8x128xf32>
    %c0_19 = arith.constant 0 : index
    %c0_20 = arith.constant 0 : index
    %c0_21 = arith.constant 0 : index
    %c0_22 = arith.constant 0 : index
    %50 = vector.load %arg10[%c0_19, %c0_20, %c0_21, %c0_22] : memref<1x8x8x128xf32, #tpu.memory_space<vmem>>, vector<1x8x8x128xf32>
    tpu.vector_store %arg10[%c0_19, %c0_20, %c0_21, %c0_22], %49 {strides = array<i32>} : memref<1x8x8x128xf32, #tpu.memory_space<vmem>>, vector<1x8x8x128xf32>,
    return
  }
  func.func @transform_0(%arg0: i32, %arg1: i32, %arg2: i32) -> (i32, i32, i32) {
    %c0_i32 = arith.constant 0 : i32
    %c0_i32_0 = arith.constant 0 : i32
    return %arg0, %arg1, %c0_i32 : i32, i32, i32
  }
  func.func @transform_1(%arg0: i32, %arg1: i32, %arg2: i32) -> (i32, i32, i32) {
    %c0_i32 = arith.constant 0 : i32
    %c0_i32_0 = arith.constant 0 : i32
    return %arg0, %c0_i32, %arg2 : i32, i32, i32
  }
  func.func @transform_2(%arg0: i32, %arg1: i32, %arg2: i32) -> (i32, i32, i32) {
    %c0_i32 = arith.constant 0 : i32
    %c0_i32_0 = arith.constant 0 : i32
    return %arg0, %arg1, %c0_i32 : i32, i32, i32
  }
  func.func @transform_3(%arg0: i32, %arg1: i32, %arg2: i32) -> (i32, i32, i32) {
    %c0_i32 = arith.constant 0 : i32
    %c0_i32_0 = arith.constant 0 : i32
    return %arg0, %c0_i32, %arg2 : i32, i32, i32
  }
  func.func @transform_4(%arg0: i32, %arg1: i32, %arg2: i32) -> (i32, i32) {
    %c0_i32 = arith.constant 0 : i32
    %c0_i32_0 = arith.constant 0 : i32
    %c0_i32_1 = arith.constant 0 : i32
    return %c0_i32, %c0_i32_0 : i32, i32
  }
  func.func @transform_5(%arg0: i32, %arg1: i32, %arg2: i32) -> (i32, i32) {
    %c0_i32 = arith.constant 0 : i32
    %c0_i32_0 = arith.constant 0 : i32
    %c0_i32_1 = arith.constant 0 : i32
    return %c0_i32, %c0_i32_0 : i32, i32
  }
  func.func @transform_6(%arg0: i32, %arg1: i32, %arg2: i32) -> (i32, i32) {
    %c0_i32 = arith.constant 0 : i32
    %c0_i32_0 = arith.constant 0 : i32
    %c0_i32_1 = arith.constant 0 : i32
    return %c0_i32, %c0_i32_0 : i32, i32
  }
  func.func @transform_7(%arg0: i32, %arg1: i32, %arg2: i32) -> (i32, i32, i32, i32) {
    %c0_i32 = arith.constant 0 : i32
    %c0_i32_0 = arith.constant 0 : i32
    return %arg0, %arg1, %arg2, %c0_i32 : i32, i32, i32, i32
  }
}

</mosaic_0001>

<bundles_post_ra>
// kernel: tpu_custom_call.1
= control target key start
LH: loop header
LB: loop body
LE: loop exit
PB: predicated region body
PF: predicated region fallthrough
CT: control target
= control target key end

     0   :  { %12 = vsyncpa [#allocation3], 0  ;;  %s1091_s0 = inlined_call_operand.vmem [shape: f32[2,8,3], index: 0, kind: input, shape index: {}]   ;;  %s1092_s1 = inlined_call_operand.vmem [shape: f32[2,3,8], index: 1, kind: input, shape index: {}]   ;;  %s1093_s2 = inlined_call_operand.vmem [shape: f32[2,8,1], index: 2, kind: input, shape index: {}]   ;;  %s1094_s3 = inlined_call_operand.vmem [shape: f32[2,1,8], index: 3, kind: input, shape index: {}]   ;;  %s1095_s4 = inlined_call_operand.vmem [shape: f32[1,128], index: 4, kind: input, shape index: {}]   ;;  %s1096_s5 = inlined_call_operand.vmem [shape: f32[1,128], index: 5, kind: input, shape index: {}]   ;;  %s1097_s6 = inlined_call_operand.vmem [shape: f32[1,128], index: 6, kind: input, shape index: {}]   ;;  %s1098_s7 = inlined_call_operand.hbm [shape: f32[2,8,8,128], index: 7, kind: output, shape index: {}]  }
   0x1   :  { %14 = vsyncpa [#allocation3 + $0x1], 0  ;;  %s949_s24 = smov 0   ;;  %s951_s25 = smov 0  }
   0x2   :  { %s953_s26 = smov 0   ;;  %s955_s27 = smov 0  }
   0x3   :  { %s957_s28 = smov 0   ;;  %s959_s29 = smov 0  }
   0x4 LB: > { %s721_s30 = sadd.s32 4294967295, %s901_s29   ;;  %s722_s8 = sadd.s32 4294967294, %s901_s29   ;;  %s901_s29 = sphi %s959_s29, %s20_s29   ;;  %s897_s28 = sphi %s957_s28, %s1105_s28   ;;  %s893_s27 = sphi %s955_s27, %s1104_s27   ;;  %s889_s26 = sphi %s953_s26, %s1103_s26   ;;  %s885_s25 = sphi %s951_s25, %s1102_s25   ;;  %s881_s24 = sphi %s949_s24, %s1101_s24  }
   0x5   : > { %s39_s9 = sadd.s32 1, %s897_s28  ;;  %s225_s10 = sadd.s32 1, %s889_s26 }
   0x6   : > { %p41_p0 = scmp.ge.s32.totalorder %s39_s9, 2  ;;  %p235_p1 = scmp.ne.s32.totalorder %s889_s26, %s885_s25 }
   0x7   : > { %p236_p2 = scmp.eq.s32.totalorder %s721_s30, 1  ;;  %p241_p3 = scmp.ne.s32.totalorder %s885_s25, %s881_s24 }
   0x8   : > { %s1107_s9 = smov (%p41_p0, %s39_s9), 0  ;;  %p242_p5 = scmp.eq.s32.totalorder %s722_s8, 1 }
   0x9   : > { %p989_p4 = por %p236_p2, %p235_p1  ;;  %s218_s12 = ssub.s32 %s897_s28, %s1107_s9 }
   0xa   : > { %p725_p6 = scmp.ge.s32.totalorder %s901_s29, 1  ;;  %p223_p7 = scmp.eq.s32.totalorder %s218_s12, 0 }
   0xb   : > { %p996_p8 = por %p242_p5, %p241_p3  ;;  %p308_p9 = scmp.lt.s32.totalorder %s901_s29, 3 }
   0xc   : > { %s1002_s14 = scalar_select %p223_p7, %s889_s26, %s225_s10  }
   0xd   : > { %p309_p10 = pnand %p725_p6, %p308_p9 }
   0xe   : > { %p362_p11 = scmp.lt.s32.totalorder (!%p309_p10), %s893_s27, 1  ;;  %v903_v0 = vmov (!%p309_p10), 0   ;;  %v904_v1 = vmov (!%p309_p10), 2   ;;  %v905_v4 = vmov (!%p309_p10), 1   ;;  %v397_v5 = vlaneseq (!%p309_p10)  ;;  %v731_v47 = vld [vmem:[%s1095_s4] ss:$0 sm:$0xff] (!%p309_p10) }
   0xf   : > { %312 = sbr.rel (%p309_p10) target bundleno = 350 (0x15e), region = 48  ;;  %800 = vset.pattern.permute.xlu0 (!%p309_p10), %v903_v0  ;;  %802 = vset.pattern.permute.xlu1 (!%p309_p10), %v904_v1  ;;  %v732_v52 = vld [vmem:[%s1097_s6] ss:$0 sm:$0xff] (!%p309_p10)  ;;  %s359_s21 = sand.u32 (!%p309_p10), 1, %s885_s25  }
  0x10   : > { %v398_v6 = vshrl.u32 (!%p309_p10), %v397_v5, 7 }
  0x12   : > { %v399_v7 = vsub.s32 (!%p309_p10), 0, %v398_v6  ;;  %v421_v8 = vsub.s32 (!%p309_p10), 2, %v398_v6  ;;  %v410_v10 = vsub.s32 (!%p309_p10), 1, %v398_v6  ;;  %v475_v36 = vsub.s32 (!%p309_p10), 3, %v398_v6 }
  0x13   : > { %v489_v39 = vsub.s32 (!%p309_p10), 5, %v398_v6  ;;  %v482_v40 = vsub.s32 (!%p309_p10), 4, %v398_v6  ;;  %v503_v43 = vsub.s32 (!%p309_p10), 7, %v398_v6  ;;  %v496_v44 = vsub.s32 (!%p309_p10), 6, %v398_v6 }
  0x16   : > { %s1006_s15 = scalar_select %p362_p11, %s893_s27, 1 }
  0x18   : > { %s727_s16 = sshll.u32 %s1006_s15, 3  ;;  %s728_s23 = sshll.u32 %s1006_s15, 2 }
  0x19   : > { %s368_s19 = scalar_lea.vmem %s1091_s0, %s727_s16  ;;  %s382_s22 = scalar_lea.vmem %s1093_s2, %s727_s16 }
  0x1a   : > { %v390_v2 = vld [vmem:[%s368_s19] sm:$0xff]  ;;  %s375_s10 = scalar_lea.vmem %s1092_s1, %s728_s23  ;;  %s388_s17 = scalar_lea.vmem %s1094_s3, %s1006_s15 }
  0x1b   : > { %394 = vperm.xlu0 %800, %v390_v2   ;;  %416 = vperm.xlu1 %802, %v390_v2   ;;  %v433_v3 = vld [vmem:[%s382_s22] sm:$0xff]  ;;  %s726_s22 = sshll.u32 %s359_s21, 6  ;;  %s906_s19 = smov [#allocation2]  }
  0x1c   : > { %v391_v9 = vld [vmem:[%s375_s10] sm:$0x7]  ;;  %s361_s8 = scalar_lea.vmem [#allocation2], %s726_s22  ;;  %s739_s10 = sshll.u32 %s893_s27, 10 }
  0x1d   : > { %v400_v11 = vrot.slane %v391_v9, %v399_v7  ;;  %v422_v13 = vrot.slane %v391_v9, %v421_v8  ;;  %v411_v15 = vrot.slane %v391_v9, %v410_v10  ;;  %v730_v25 = vld [vmem:[%s388_s17] ss:$0 sm:$0xff]  ;;  %s599_s12 = sshll.u32 %s361_s8, 4  ;;  %s1039_s15 = scalar_lea.hbm %s1098_s7, %s739_s10  ;;  %s1041_s12 = int_to_ptr.vmem [resolvable:$true] %s599_s12 }
  0x1e   : > { %s1045_s27 = scalar_lea.sflag [#allocation3], %s359_s21  ;;  %s823_s18 = scalar_lea.vmem %s1041_s12, 1024 }
  0x1f   : > { %801 = vset.pattern.permute.xlu0 %v905_v4  ;;  %803 = vset.pattern.permute.xlu1 %v903_v0  ;;  %p824_p12 = scmp.ne.s32.totalorder %s1041_s12, %s823_s18  ;;  %s827_s20 = sshll.u32 %s906_s19, 4  ;;  %s828_s20 = int_to_ptr.vmem [resolvable:$false] %s827_s20 }
  0x20   : > { %405 = vperm.xlu0 %801, %v390_v2   ;;  %437 = vperm.xlu1 %803, %v433_v3   ;;  %s829_s22 = scalar_lea.vmem %s828_s20, 2048  ;;  %p830_p1 = scmp.lt.s32.totalorder %s1041_s12, %s828_s20 }
  0x21   : > { %p825_p13 = pnand %p824_p12, %p989_p4  ;;  %p831_p2 = scmp.lt.s32.totalorder %s829_s22, %s823_s18 }
  0x23   : > { %p826_p0 = pneg %p825_p13  ;;  %p832_p3 = por %p831_p2, %p830_p1 }
  0x24   : > { %804 = vset.pattern.permute.xlu0 %v903_v0 }
  0x25   : > { %p833_p5 = pnand %p832_p3, %p826_p0 }
  0x9a   : > { %v395_v12 = vpop.permute.xlu0 %394  ;;  %v417_v14 = vpop.permute.xlu1 %416 }
  0x9b   : > { %v401_v16 = vsub.f32 %v395_v12, %v400_v11  ;;  %v423_v17 = vsub.f32 %v417_v14, %v422_v13 }
  0x9d   : > { %v402_v20 = vmul.f32 %v401_v16, %v401_v16  ;;  %v424_v22 = vmul.f32 %v423_v17, %v423_v17 }
  0x9f   : > { %v406_v18 = vpop.permute.xlu0 %405  ;;  %v438_v26 = vpop.permute.xlu1 %437 }
  0xa0   : > { %v412_v19 = vsub.f32 %v406_v18, %v411_v15  ;;  %v446_v27 = vmul.f32 %v730_v25, %v438_v26 }
  0xa2   : > { %v413_v21 = vmul.f32 %v412_v19, %v412_v19  ;;  %vm447_vm1 = vcmp.gt.f32.partialorder %v446_v27, 0.0 }
  0xa4   : > { %v414_v23 = vadd.f32 %v413_v21, %v402_v20  ;;  %v733_v21 = vld [vmem:[%s1096_s5] ss:$0 sm:$0xff] }
  0xa6   : > { %v425_v24 = vadd.f32 %v424_v22, %v414_v23 }
  0xa8   : > { %805 = vrsqrt.f32 %v425_v24  ;;  %vm428_vm0 = vcmp.eq.f32.partialorder %v425_v24, inf  ;;  %v431_v30 = vand.u32 2147483648, %v425_v24  ;;  %vm430_vm2 = vcmp.eq.f32.partialorder %v425_v24, 0.0 }
  0xb2   : > { %v806_v28 = vpop.eup %805 }
  0xb3   : > { %v427_v29 = vmul.f32 %v806_v28, %v425_v24 }
  0xb5   : > { %v429_v31 = vsel %vm428_vm0, %v425_v24, %v427_v29 }
  0xb6   : > { %v432_v32 = vsel %vm430_vm2, %v431_v30, %v429_v31 }
  0xb7   : > { %v448_v33 = vsel %vm447_vm1, %v432_v32, 1000000.0 }
  0xb8   : > { %v462_v34 = vrot.slane %v448_v33, %v410_v10  ;;  %v455_v35 = vrot.slane %v448_v33, %v399_v7  ;;  %v476_v37 = vrot.slane %v448_v33, %v475_v36  ;;  %v469_v38 = vrot.slane %v448_v33, %v421_v8 }
  0xb9   : > { %v490_v41 = vrot.slane %v448_v33, %v489_v39  ;;  %v483_v42 = vrot.slane %v448_v33, %v482_v40  ;;  %v504_v45 = vrot.slane %v448_v33, %v503_v43  ;;  %v497_v46 = vrot.slane %v448_v33, %v496_v44 }
  0xba   : > { %464 = vbcast.lane.b32.xlu0 %v462_v34, 256  ;;  %457 = vbcast.lane.b32.xlu1 %v455_v35, 256 }
  0xbe   : > { %478 = vbcast.lane.b32.xlu0 %v476_v37, 256  ;;  %471 = vbcast.lane.b32.xlu1 %v469_v38, 256 }
  0xc2   : > { %492 = vbcast.lane.b32.xlu0 %v490_v41, 256  ;;  %485 = vbcast.lane.b32.xlu1 %v483_v42, 256 }
  0xc6   : > { %506 = vbcast.lane.b32.xlu0 %v504_v45, 256  ;;  %499 = vbcast.lane.b32.xlu1 %v497_v46, 256 }
 0x12c   : > { %v465_v48 = vpop.permute.xlu0 %464  ;;  %v458_v49 = vpop.permute.xlu1 %457 }
 0x12d   : > { %v515_v50 = vsub.f32 %v465_v48, %v731_v47  ;;  %v514_v51 = vsub.f32 %v458_v49, %v731_v47 }
 0x12f   : > { %v523_v53 = vmul.f32 %v515_v50, %v515_v50  ;;  %v522_v54 = vmul.f32 %v514_v51, %v514_v51 }
 0x130   : > { %v479_v55 = vpop.permute.xlu0 %478  ;;  %v472_v56 = vpop.permute.xlu1 %471 }
 0x131   : > { %v537_v57 = vmul.f32 %v732_v52, %v523_v53  ;;  %v536_v58 = vmul.f32 %v732_v52, %v522_v54  ;;  %v517_v59 = vsub.f32 %v479_v55, %v731_v47  ;;  %v516_v60 = vsub.f32 %v472_v56, %v731_v47 }
 0x133   : > { %v546_v61 = vmul.f32 1.442695, %v537_v57  ;;  %v544_v62 = vmul.f32 1.442695, %v536_v58  ;;  %v525_v63 = vmul.f32 %v517_v59, %v517_v59  ;;  %v524_v0 = vmul.f32 %v516_v60, %v516_v60 }
 0x134   : > { %v493_v1 = vpop.permute.xlu0 %492  ;;  %v486_v2 = vpop.permute.xlu1 %485 }
 0x135   : > { %807 = vpow2.f32 %v546_v61  ;;  %v539_v3 = vmul.f32 %v732_v52, %v525_v63  ;;  %v538_v4 = vmul.f32 %v732_v52, %v524_v0  ;;  %v519_v5 = vsub.f32 %v493_v1, %v731_v47 }
 0x136   : > { %809 = vpow2.f32 %v544_v62  ;;  %v518_v6 = vsub.f32 %v486_v2, %v731_v47 }
 0x137   : > { %v550_v7 = vmul.f32 1.442695, %v539_v3  ;;  %v548_v8 = vmul.f32 1.442695, %v538_v4  ;;  %v527_v9 = vmul.f32 %v519_v5, %v519_v5 }
 0x138   : > { %v526_v10 = vmul.f32 %v518_v6, %v518_v6  ;;  %v507_v11 = vpop.permute.xlu0 %506  ;;  %v500_v12 = vpop.permute.xlu1 %499 }
 0x139   : > { %811 = vpow2.f32 %v550_v7  ;;  %v541_v13 = vmul.f32 %v732_v52, %v527_v9  ;;  %v521_v14 = vsub.f32 %v507_v11, %v731_v47  ;;  %v520_v15 = vsub.f32 %v500_v12, %v731_v47 }
 0x13a   : > { %813 = vpow2.f32 %v548_v8  ;;  %v540_v16 = vmul.f32 %v732_v52, %v526_v10 }
 0x13b   : > { %v554_v17 = vmul.f32 1.442695, %v541_v13  ;;  %v529_v18 = vmul.f32 %v521_v14, %v521_v14  ;;  %v528_v19 = vmul.f32 %v520_v15, %v520_v15 }
 0x13c   : > { %v552_v20 = vmul.f32 1.442695, %v540_v16 }
 0x13d   : > { %815 = vpow2.f32 %v554_v17  ;;  %v543_v22 = vmul.f32 %v732_v52, %v529_v18  ;;  %v542_v23 = vmul.f32 %v732_v52, %v528_v19 }
 0x13e   : > { %817 = vpow2.f32 %v552_v20 }
 0x13f   : > { %v808_v24 = vpop.eup %807  ;;  %v558_v25 = vmul.f32 1.442695, %v543_v22  ;;  %v556_v26 = vmul.f32 1.442695, %v542_v23 }
 0x140   : > { %v810_v27 = vpop.eup %809  ;;  %v567_v28 = vmul.f32 %v808_v24, %v733_v21 }
 0x141   : > { %v566_v29 = vmul.f32 %v810_v27, %v733_v21  ;;  %819 = vpow2.f32 %v558_v25 }
 0x142   : > { %575 = vst [vmem:[%s361_s8 + $0x8] sm:$0xff] %v567_v28  ;;  %821 = vpow2.f32 %v556_v26 }
 0x143   : > { %v812_v30 = vpop.eup %811  ;;  %574 = vst [vmem:[%s361_s8] sm:$0xff] %v566_v29 }
 0x144   : > { %v814_v31 = vpop.eup %813  ;;  %v569_v32 = vmul.f32 %v812_v30, %v733_v21 }
 0x145   : > { %v568_v33 = vmul.f32 %v814_v31, %v733_v21 }
 0x146   : > { %577 = vst [vmem:[%s361_s8 + $0x18] sm:$0xff] %v569_v32 }
 0x147   : > { %v816_v34 = vpop.eup %815  ;;  %576 = vst [vmem:[%s361_s8 + $0x10] sm:$0xff] %v568_v33 }
 0x148   : > { %v818_v35 = vpop.eup %817  ;;  %v571_v36 = vmul.f32 %v816_v34, %v733_v21 }
 0x149   : > { %v570_v37 = vmul.f32 %v818_v35, %v733_v21 }
 0x14a   : > { %579 = vst [vmem:[%s361_s8 + $0x28] sm:$0xff] %v571_v36 }
 0x14b   : > { %v820_v38 = vpop.eup %819  ;;  %578 = vst [vmem:[%s361_s8 + $0x20] sm:$0xff] %v570_v37 }
 0x14c   : > { %v822_v39 = vpop.eup %821  ;;  %v573_v40 = vmul.f32 %v820_v38, %v733_v21 }
 0x14d   : > { %v572_v41 = vmul.f32 %v822_v39, %v733_v21 }
 0x14e   : > { %581 = vst [vmem:[%s361_s8 + $0x38] sm:$0xff] %v573_v40 }
 0x14f   : > { %580 = vst [vmem:[%s361_s8 + $0x30] sm:$0xff] %v572_v41 }
 0x150   : > { %836 = shalt.err (!%p833_p5)
}
 0x151   : > { %s837_s21 = scalar_lea.hbm %s1039_s15, 1024  ;;  %s841_s8 = scalar_lea.hbm %s1098_s7, 2048 }
 0x152   : > { %p838_p6 = scmp.ne.s32.totalorder %s1039_s15, %s837_s21  ;;  %p842_p10 = scmp.lt.u32.totalorder %s1039_s15, %s1098_s7 }
 0x153   : > { %p843_p11 = scmp.lt.u32.totalorder %s841_s8, %s837_s21  ;;  %p845_p13 = scmp.lt.u32.totalorder %s837_s21, %s1039_s15 }
 0x154   : > { %p839_p7 = pnand %p838_p6, %p989_p4 }
 0x155   : > { %p844_p12 = por %p843_p11, %p842_p10 }
 0x156   : > { %p840_p9 = pneg %p839_p7 }
 0x157   : > { %p846_p0 = por %p845_p13, %p844_p12 }
 0x159   : > { %p847_p1 = pnand %p846_p0, %p840_p9 }
 0x15b   : > { %850 = shalt.err (!%p847_p1)
}
 0x15c   : > { %s907_s17 = smov 128   ;;  %s908_s18 = smov 8  }
 0x15d   : > { %740 = dma.vmem_to_hbm [thread:$0]  (%p989_p4), %s1041_s12, 1024, %s1039_s15, %s1045_s27, %s907_s17, %s907_s17, %s908_s18  }
 0x15e PF: > { %p746_p2 = scmp.ge.s32.totalorder %s901_s29, 2  ;;  %s614_s19 = sand.u32 1, %s881_s24  }
 0x15f   : > { %s615_s20 = scalar_lea.sflag [#allocation3], %s614_s19 }
 0x160   : > { %p743_p3 = pnand %p746_p2, %p996_p8 }
 0x162   : > { %876 = dma.done.wait (!%p743_p3), %s615_s20, 1024  }
 0x163   : > { %878 = vsyncadd (!%p743_p3), %s615_s20, 4294966272  ;;  %s20_s29 = sadd.s32 1, %s901_s29   ;;  %s1101_s24 = smov %s885_s25 }
 0x164   : > { %p17_p5 = scmp.ge.s32.totalorder %s20_s29, 4   ;;  %s1102_s25 = smov %s889_s26 }
 0x165   : > { %s1103_s26 = smov %s1002_s14  ;;  %s1104_s27 = smov %s897_s28 }
 0x166   : > { %s1105_s28 = smov %s1107_s9  ;;  %19 = sbr.rel (!%p17_p5) target bundleno = 4 (0x4), region = 92 }
 0x16d   :  { %620 = vsyncpa [#allocation3], 1 }
 0x16e   :  { %622 = vsyncpa [#allocation3 + $0x1], 1 }

</bundles_post_ra>
